<compile_context>
chip_gen: v7x
topology: tpu7x:2x2x1
jax: 0.10.0
libtpu: 0.0.40
codegen_flags: <defaults>
</compile_context>

<pallas_src>
import math

import jax
import jax.numpy as jnp
from jax import lax
from jax.experimental import pallas as pl
from jax.experimental.pallas import tpu as pltpu


def _round_up(x, m):
    return ((x + m - 1) // m) * m


def _zeros_index_map(ndim):
    return lambda i: (0,) * ndim


def _vmem_limit_bytes(footprint):
    """~1.5x the real tile footprint, floored for compiler scratch, capped for v7x."""
    limit = max(32 << 20, footprint + (footprint >> 1) + (4 << 20))
    return int(min(limit, max(40 << 20, footprint + (8 << 20))))


# --------------------------------------------------------------------------
# Pallas kernel 1: features = fc(x) + MLP(x);  features_norm = l2norm(features)
#   (BatchNorm folded into w1/b1; fc bias + mlp bias folded into bout;
#    bf16 weights, f32 accumulation; feat output bf16, featn output f32)
# --------------------------------------------------------------------------
def _feat_kernel(x_ref, wfc_ref, w1_ref, b1_ref, w2_ref, bout_ref,
                 feat_ref, featn_ref):
    x = x_ref[...].astype(jnp.bfloat16)                               # (TM, D)
    fc = jnp.dot(x, wfc_ref[...], preferred_element_type=jnp.float32)
    h = jnp.dot(x, w1_ref[...], preferred_element_type=jnp.float32) + b1_ref[...]
    h = jnp.maximum(h, 0.0)                                           # ReLU (BN folded)
    mlp = jnp.dot(h.astype(jnp.bfloat16), w2_ref[...],
                  preferred_element_type=jnp.float32)
    feat = fc + mlp + bout_ref[...]                                   # fused bias
    feat_ref[...] = feat.astype(feat_ref.dtype)                       # bf16 writeback
    # l2norm(X, dim=-1): single EUP rsqrt instead of sqrt + add + reciprocal.
    inv_norm = lax.rsqrt(jnp.sum(feat * feat, axis=-1, keepdims=True) + 1e-16)
    featn_ref[...] = feat * inv_norm


def _feat_specs(tm, D, H, E, single_buffer_weights):
    def const_spec(shape):
        idx = _zeros_index_map(len(shape))
        if single_buffer_weights:
            # Grid-invariant blocks: one resident VMEM copy instead of two.
            return pl.BlockSpec(shape, idx, pipeline_mode=pl.Buffered(1))
        return pl.BlockSpec(shape, idx)

    in_specs = [
        pl.BlockSpec((tm, D), lambda i: (i, 0)),   # x rows (tiled, pipelined)
        const_spec((D, E)),                        # fc weight (bf16)
        const_spec((D, H)),                        # mlp layer-0 weight (BN folded, bf16)
        const_spec((1, H)),                        # mlp layer-0 bias (BN folded)
        const_spec((H, E)),                        # mlp layer-1 weight (bf16)
        const_spec((1, E)),                        # fused fc+mlp output bias
    ]
    out_specs = (pl.BlockSpec((tm, E), lambda i: (i, 0)),
                 pl.BlockSpec((tm, E), lambda i: (i, 0)))
    return in_specs, out_specs


def encode_features(images, kparams, tm=256):
    B, N, D = images.shape
    E = kparams["wfc"].shape[1]
    H = kparams["w1"].shape[1]
    M = B * N
    # MXU-sized row tile; shrink for tiny inputs so padding stays bounded.
    tm = min(tm, _round_up(M, 8))
    # v7x megacore: keep >=2 grid steps on the "parallel" row axis when the
    # problem is big enough to split across the two TensorCores.
    if M > 2 * 128 and pl.cdiv(M, tm) < 2:
        tm = _round_up(pl.cdiv(M, 2), 8)
    Mp = _round_up(M, tm)
    x = images.reshape(M, D)
    if Mp != M:
        x = jnp.pad(x, ((0, Mp - M), (0, 0)))

    # Real per-step footprint (worst case: double-buffered weights for the
    # fallback path): x f32 in, bf16 feat + f32 featn out, bf16 weights.
    w_bytes = 2 * ((D * E + D * H + H * E) * 2 + (H + E) * 4)
    footprint = 2 * tm * D * 4 + 2 * tm * E * (2 + 4) + w_bytes
    vmem_limit = _vmem_limit_bytes(footprint)

    def run(single_buffer_weights):
        in_specs, out_specs = _feat_specs(tm, D, H, E, single_buffer_weights)
        return pl.pallas_call(
            _feat_kernel,
            out_shape=(jax.ShapeDtypeStruct((Mp, E), jnp.bfloat16),
                       jax.ShapeDtypeStruct((Mp, E), jnp.float32)),
            grid=(Mp // tm,),
            in_specs=in_specs,
            out_specs=out_specs,
            compiler_params=pltpu.CompilerParams(
                dimension_semantics=("parallel",),
                vmem_limit_bytes=vmem_limit),
        )(x, kparams["wfc"], kparams["w1"], kparams["b1"],
          kparams["w2"], kparams["bout"])

    def finish(outs):
        feat, featn = outs
        return feat[:M].reshape(B, N, E), featn[:M].reshape(B, N, E)

    if hasattr(pl, "Buffered"):            # API-level capability check
        try:
            return finish(run(single_buffer_weights=True))
        except Exception:
            # TODO(synk): this build exposes pl.Buffered but rejected it at
            # lowering; fall back to default double-buffered weight blocks
            # (vmem_limit already sized for that case).
            pass
    return finish(run(single_buffer_weights=False))


# --------------------------------------------------------------------------
# Pallas kernel 2: GPO pooling head (batch-tiled)
#   wts    = softmax(masked_scores / 0.1, axis=1)     (scores precomputed, (tb,N))
#   pooled = sum_n wts[b, n] * sorted_features[b, n, :]   -- batched MXU contraction
# --------------------------------------------------------------------------
def _gpool_kernel(scores_ref, feats_ref, pooled_ref):
    s = scores_ref[...] * 10.0                      # scores / 0.1     (tb, N)
    s = s - jnp.max(s, axis=1, keepdims=True)
    e = jnp.exp(s)
    denom = jnp.sum(e, axis=1, keepdims=True)
    wts = e * pl.reciprocal(denom, approx=True)     # softmax over regions
    feats = feats_ref[...]                          # (tb, N, E), bf16
    # Batched (1,N)x(N,E) contraction on the MXU (flash-attn 'bqk,bkd' pattern)
    # instead of a broadcast-multiply + cross-sublane reduce on the VPU/XLU.
    pooled = jnp.einsum("bqn,bne->bqe",
                        wts[:, None, :].astype(feats.dtype), feats,
                        preferred_element_type=jnp.float32)           # (tb, 1, E)
    pooled_ref[...] = pooled[:, 0, :]


def _gru_direction(x_seq, w_ih, w_hh, b_ih, b_hh):
    """PyTorch-style single-direction GRU over (B, T, I) with zero init state."""
    B, T, _ = x_seq.shape

    def step(h, x_t):
        gi = x_t @ w_ih.T + b_ih
        gh = h @ w_hh.T + b_hh
        i_r, i_z, i_n = jnp.split(gi, 3, axis=-1)
        h_r, h_z, h_n = jnp.split(gh, 3, axis=-1)
        r = jax.nn.sigmoid(i_r + h_r)
        z = jax.nn.sigmoid(i_z + h_z)
        n = jnp.tanh(i_n + r * h_n)
        h_new = (1.0 - z) * n + z * h
        return h_new, h_new

    h0 = jnp.zeros((B, w_hh.shape[1]), jnp.float32)
    _, ys = lax.scan(step, h0, jnp.swapaxes(x_seq, 0, 1))
    return jnp.swapaxes(ys, 0, 1)                   # (B, T, Hh)


def _prepare_gpo_inputs(features, lengths, params, d_pe=32):
    """Positional encodings, bi-GRU embeddings, mask, sorted/masked features."""
    B, N, _ = features.shape
    lengths_i = lengths.astype(jnp.int32)
    max_len = N  # features are already sized to max_len

    pos = jnp.arange(max_len, dtype=jnp.float32)[:, None]
    div = jnp.exp(jnp.arange(0, d_pe, 2, dtype=jnp.float32) * (-math.log(10000.0) / d_pe))
    pe = jnp.zeros((max_len, d_pe), jnp.float32)
    pe = pe.at[:, 0::2].set(jnp.sin(pos * div))
    pe = pe.at[:, 1::2].set(jnp.cos(pos * div))

    mask = (jnp.arange(max_len)[None, :] < lengths_i[:, None]).astype(jnp.float32)  # (B,N)
    pes = jnp.broadcast_to(pe[None], (B, max_len, d_pe)) * mask[:, :, None]

    # Bidirectional GRU with packed-sequence semantics: the backward pass runs
    # reversed WITHIN each sample's length.
    out_fwd = _gru_direction(pes, params["gru_w_ih_f"], params["gru_w_hh_f"],
                             params["gru_b_ih_f"], params["gru_b_hh_f"])
    rev_idx = jnp.clip(lengths_i[:, None] - 1 - jnp.arange(max_len)[None, :], 0, max_len - 1)
    pes_rev = jnp.take_along_axis(pes, rev_idx[:, :, None], axis=1)
    out_bwd_rev = _gru_direction(pes_rev, params["gru_w_ih_b"], params["gru_w_hh_b"],
                                 params["gru_b_ih_b"], params["gru_b_hh_b"])
    out_bwd = jnp.take_along_axis(out_bwd_rev, rev_idx[:, :, None], axis=1)
    out_emb = 0.5 * (out_fwd + out_bwd)             # (B, N, 32)

    # Sort features descending per (batch, feature-dim) within valid positions.
    # Keep everything in `features.dtype` (bf16 from kernel 1) so the pooling
    # kernel streams a half-width slab.
    mask3 = mask[:, :, None] > 0
    sentinel = jnp.asarray(-10000.0, features.dtype)
    masked = jnp.where(mask3, features, sentinel)
    sorted_desc = -jnp.sort(-masked, axis=1)
    sorted_feats = jnp.where(mask3, sorted_desc, jnp.zeros((), features.dtype))
    return out_emb, mask, sorted_feats


def gpo_pool(features, lengths, params, tb=64):
    B, N, E = features.shape
    out_emb, mask, sorted_feats = _prepare_gpo_inputs(features, lengths, params)
    # Tiny (B, N, 32) score projection stays in plain JAX so the kernel only
    # streams the lane-dense (tb, N, E) slab + a (tb, N) score row.
    scores = jnp.sum(out_emb * params["gpo_lin_w"], axis=-1)          # (B, N)
    scores = jnp.where(mask > 0, scores, -10000.0)

    tb = min(tb, _round_up(B, 8))
    # v7x megacore: keep >=2 "parallel" grid steps when the batch is big enough.
    if B > 16 and pl.cdiv(B, tb) < 2:
        tb = _round_up(pl.cdiv(B, 2), 8)
    Bp = _round_up(B, tb)
    if Bp != B:
        scores = jnp.pad(scores, ((0, Bp - B), (0, 0)))
        sorted_feats = jnp.pad(sorted_feats, ((0, Bp - B), (0, 0), (0, 0)))

    feat_bytes = sorted_feats.dtype.itemsize
    footprint = 2 * tb * N * 4 + 2 * tb * N * E * feat_bytes + 2 * tb * E * 4

    pooled = pl.pallas_call(
        _gpool_kernel,
        out_shape=jax.ShapeDtypeStruct((Bp, E), jnp.float32),
        grid=(Bp // tb,),
        in_specs=[
            pl.BlockSpec((tb, N), lambda i: (i, 0)),
            pl.BlockSpec((tb, N, E), lambda i: (i, 0, 0)),
        ],
        out_specs=pl.BlockSpec((tb, E), lambda i: (i, 0)),
        compiler_params=pltpu.CompilerParams(
            dimension_semantics=("parallel",),
            vmem_limit_bytes=_vmem_limit_bytes(footprint)),
    )(scores, sorted_feats)
    return pooled[:B]


def encoder_image_aggr(images, image_lengths, kparams):
    """Returns (pooled_features, l2-normalized features), like the nn.Module."""
    features, features_norm = encode_features(images, kparams)
    pooled = gpo_pool(features, image_lengths, kparams)
    return pooled, features_norm


# --------------------------------------------------------------------------
# Parameter construction (raw module-style) + kernel-side preparation
# --------------------------------------------------------------------------
def init_params(key, img_dim, embed_size, d_pe=32, d_hid=32):
    H = embed_size // 2
    ks = jax.random.split(key, 16)

    def u(k, shape, scale):
        return jax.random.uniform(k, shape, jnp.float32, -scale, scale)

    r = math.sqrt(6.0) / math.sqrt(img_dim + embed_size)  # module's Xavier init for fc
    sh = 1.0 / math.sqrt(d_hid)
    return {
        "wfc": u(ks[0], (img_dim, embed_size), r),
        "bfc": jnp.zeros((1, embed_size), jnp.float32),
        # MLP(img_dim, embed//2, embed, 2)
        "w1": u(ks[1], (img_dim, H), 1.0 / math.sqrt(img_dim)),
        "b1": u(ks[2], (1, H), 1.0 / math.sqrt(img_dim)),
        "bn_g": jnp.ones((1, H), jnp.float32),
        "bn_b": jnp.zeros((1, H), jnp.float32),
        "bn_mu": jnp.zeros((1, H), jnp.float32),
        "bn_var": jnp.ones((1, H), jnp.float32),
        "w2": u(ks[3], (H, embed_size), 1.0 / math.sqrt(H)),
        "b2": u(ks[4], (1, embed_size), 1.0 / math.sqrt(H)),
        # GPO(32, 32): bidirectional 1-layer GRU + Linear(32, 1, bias=False)
        "gru_w_ih_f": u(ks[5], (3 * d_hid, d_pe), sh),
        "gru_w_hh_f": u(ks[6], (3 * d_hid, d_hid), sh),
        "gru_b_ih_f": u(ks[7], (3 * d_hid,), sh),
        "gru_b_hh_f": u(ks[8], (3 * d_hid,), sh),
        "gru_w_ih_b": u(ks[9], (3 * d_hid, d_pe), sh),
        "gru_w_hh_b": u(ks[10], (3 * d_hid, d_hid), sh),
        "gru_b_ih_b": u(ks[11], (3 * d_hid,), sh),
        "gru_b_hh_b": u(ks[12], (3 * d_hid,), sh),
        "gpo_lin_w": u(ks[13], (1, d_hid), sh),
    }


def prepare_kernel_params(p):
    """Fold eval-mode BN into w1/b1, fuse fc+mlp output biases, bf16 weights."""
    scale = p["bn_g"] / jnp.sqrt(p["bn_var"] + 1e-5)          # (1, H)
    kp = dict(p)
    kp["wfc"] = p["wfc"].astype(jnp.bfloat16)
    kp["w1"] = (p["w1"] * scale).astype(jnp.bfloat16)
    kp["b1"] = (p["b1"] - p["bn_mu"]) * scale + p["bn_b"]
    kp["w2"] = p["w2"].astype(jnp.bfloat16)
    kp["bout"] = p["bfc"] + p["b2"]                           # fused (1, E) bias
    for k in ("bn_g", "bn_b", "bn_mu", "bn_var", "bfc", "b2"):
        kp.pop(k)
    return kp


# --------------------------------------------------------------------------
# Pure-JAX references
# --------------------------------------------------------------------------
def _ref_features(images, p):
    """Original f32 module semantics (un-folded BN, f32 weights)."""
    B, N, D = images.shape
    x = images.reshape(B * N, D)
    hi = jax.lax.Precision.HIGHEST
    fc = jnp.dot(x, p["wfc"], precision=hi) + p["bfc"]
    h = jnp.dot(x, p["w1"], precision=hi) + p["b1"]
    h = (h - p["bn_mu"]) / jnp.sqrt(p["bn_var"] + 1e-5) * p["bn_g"] + p["bn_b"]
    h = jnp.maximum(h, 0.0)
    mlp = jnp.dot(h, p["w2"], precision=hi) + p["b2"]
    feat = fc + mlp
    norm = jnp.sqrt(jnp.sum(feat * feat, axis=-1, keepdims=True)) + 1e-8
    E = p["wfc"].shape[1]
    return feat.reshape(B, N, E), (feat / norm).reshape(B, N, E)


def _ref_features_matched(images, kp):
    """Reference mirroring the kernel's bf16 / folded-BN / fused-bias math."""
    B, N, D = images.shape
    E = kp["wfc"].shape[1]
    x = images.reshape(B * N, D).astype(jnp.bfloat16)
    fc = jnp.dot(x, kp["wfc"], preferred_element_type=jnp.float32)
    h = jnp.dot(x, kp["w1"], preferred_element_type=jnp.float32) + kp["b1"]
    h = jnp.maximum(h, 0.0)
    mlp = jnp.dot(h.astype(jnp.bfloat16), kp["w2"],
                  preferred_element_type=jnp.float32)
    feat = fc + mlp + kp["bout"]
    inv_norm = lax.rsqrt(jnp.sum(feat * feat, axis=-1, keepdims=True) + 1e-16)
    featn = feat * inv_norm
    return (feat.astype(jnp.bfloat16).reshape(B, N, E),
            featn.reshape(B, N, E))


def _ref_pool(features, lengths, params):
    """Original f32 GPO semantics."""
    out_emb, mask, sorted_feats = _prepare_gpo_inputs(features, lengths, params)
    scores = jnp.sum(out_emb * params["gpo_lin_w"], axis=-1)
    scores = jnp.where(mask > 0, scores, -10000.0)
    wts = jax.nn.softmax(scores / 0.1, axis=1)
    return jnp.sum(sorted_feats.astype(jnp.float32) * wts[:, :, None], axis=1)


def _ref_pool_matched(features, lengths, params):
    """Reference mirroring the kernel's bf16 batched-contraction pooling."""
    out_emb, mask, sorted_feats = _prepare_gpo_inputs(features, lengths, params)
    scores = jnp.sum(out_emb * params["gpo_lin_w"], axis=-1)
    scores = jnp.where(mask > 0, scores, -10000.0)
    wts = jax.nn.softmax(scores / 0.1, axis=1)
    return jnp.einsum("bn,bne->be", wts.astype(sorted_feats.dtype), sorted_feats,
                      preferred_element_type=jnp.float32)


if __name__ == "__main__":
    B, N, img_dim, embed_size = 2, 8, 64, 128
    key = jax.random.PRNGKey(0)
    k_param, k_x = jax.random.split(key)

    raw_params = init_params(k_param, img_dim, embed_size)
    kparams = prepare_kernel_params(raw_params)
    images = jax.random.normal(k_x, (B, N, img_dim), jnp.float32)
    image_lengths = jnp.array([8.0, 6.0], jnp.float32)

    pooled, feat_norm = encoder_image_aggr(images, image_lengths, kparams)
    jax.block_until_ready((pooled, feat_norm))

    assert pooled.shape == (B, embed_size)
    assert feat_norm.shape == (B, N, embed_size)
    assert pooled.dtype == jnp.float32 and feat_norm.dtype == jnp.float32

    # Tight check vs. a reference that mirrors the kernel's bf16/folded math.
    mfeat, mfeatn = _ref_features_matched(images, kparams)
    mpooled = _ref_pool_matched(mfeat, image_lengths, kparams)
    assert jnp.allclose(feat_norm, mfeatn, rtol=1e-2, atol=1e-2)
    assert jnp.allclose(pooled, mpooled, rtol=1e-2, atol=1e-2)

    # Loose check vs. the original f32 module semantics (bf16-weight/storage error only).
    rfeat, rfeatn = _ref_features(images, raw_params)
    rpooled = _ref_pool(rfeat, image_lengths, raw_params)
    assert jnp.allclose(feat_norm, rfeatn, rtol=5e-2, atol=5e-2)
    assert jnp.allclose(pooled, rpooled, rtol=5e-2, atol=5e-2)

    assert bool(jnp.all(jnp.isfinite(pooled))) and bool(jnp.all(jnp.isfinite(feat_norm)))
    print("KERNEL_OK")
</pallas_src>

<mosaic_0001>
module attributes {stable_mosaic.version = 11 : i64} {
  func.func @_feat_kernel(%arg0: i32, %arg1: memref<16x64xf32, #tpu.memory_space<vmem>>, %arg2: memref<64x128xbf16, #tpu.memory_space<vmem>>, %arg3: memref<64x64xbf16, #tpu.memory_space<vmem>>, %arg4: memref<1x64xf32, #tpu.memory_space<vmem>>, %arg5: memref<64x128xbf16, #tpu.memory_space<vmem>>, %arg6: memref<1x128xf32, #tpu.memory_space<vmem>>, %arg7: memref<16x128xbf16, #tpu.memory_space<vmem>>, %arg8: memref<16x128xf32, #tpu.memory_space<vmem>>) attributes {dimension_semantics = [#tpu.dimension_semantics<parallel>], iteration_bounds = array<i64: 1>, scalar_prefetch = 0 : i64, scratch_operands = 0 : i64, tpu.core_type = #tpu.core_type<tc>, window_params = [{transform_indices = @transform_0, window_bounds = array<i64: 16, 64>}, {pipeline_mode = #tpu.pipeline_mode<synchronous>, transform_indices = @transform_1, window_bounds = array<i64: 64, 128>}, {pipeline_mode = #tpu.pipeline_mode<synchronous>, transform_indices = @transform_2, window_bounds = array<i64: 64, 64>}, {pipeline_mode = #tpu.pipeline_mode<synchronous>, transform_indices = @transform_3, window_bounds = array<i64: 1, 64>}, {pipeline_mode = #tpu.pipeline_mode<synchronous>, transform_indices = @transform_4, window_bounds = array<i64: 64, 128>}, {pipeline_mode = #tpu.pipeline_mode<synchronous>, transform_indices = @transform_5, window_bounds = array<i64: 1, 128>}, {transform_indices = @transform_6, window_bounds = array<i64: 16, 128>}, {transform_indices = @transform_7, window_bounds = array<i64: 16, 128>}]} {
    %c0 = arith.constant 0 : index
    %c0_0 = arith.constant 0 : index
    %0 = vector.load %arg1[%c0, %c0_0] : memref<16x64xf32, #tpu.memory_space<vmem>>, vector<16x64xf32>
    %1 = arith.truncf %0 : vector<16x64xf32> to vector<16x64xbf16>
    %c0_1 = arith.constant 0 : index
    %c0_2 = arith.constant 0 : index
    %2 = vector.load %arg2[%c0_1, %c0_2] : memref<64x128xbf16, #tpu.memory_space<vmem>>, vector<64x128xbf16>
    %cst = arith.constant dense<0.000000e+00> : vector<16x128xf32>
    %3 = tpu.matmul %1, %2, %cst {dimension_numbers = #tpu.dot_dimension_numbers<[1], [0], [0], [1], [0, 0, 1, 1], [], []>} : vector<16x64xbf16>, vector<64x128xbf16>, vector<16x128xf32> -> vector<16x128xf32>
    %c0_3 = arith.constant 0 : index
    %c0_4 = arith.constant 0 : index
    %4 = vector.load %arg3[%c0_3, %c0_4] : memref<64x64xbf16, #tpu.memory_space<vmem>>, vector<64x64xbf16>
    %cst_5 = arith.constant dense<0.000000e+00> : vector<16x64xf32>
    %5 = tpu.matmul %1, %4, %cst_5 {dimension_numbers = #tpu.dot_dimension_numbers<[1], [0], [0], [1], [0, 0, 1, 1], [], []>} : vector<16x64xbf16>, vector<64x64xbf16>, vector<16x64xf32> -> vector<16x64xf32>
    %c0_6 = arith.constant 0 : index
    %c0_7 = arith.constant 0 : index
    %6 = vector.load %arg4[%c0_6, %c0_7] : memref<1x64xf32, #tpu.memory_space<vmem>>, vector<1x64xf32>
    %7 = vector.broadcast %6 : vector<1x64xf32> to vector<16x64xf32>
    %8 = arith.addf %5, %7 : vector<16x64xf32>
    %cst_8 = arith.constant 0.000000e+00 : f32
    %9 = vector.broadcast %cst_8 : f32 to vector<16x64xf32>
    %10 = arith.maximumf %8, %9 : vector<16x64xf32>
    %11 = arith.truncf %10 : vector<16x64xf32> to vector<16x64xbf16>
    %c0_9 = arith.constant 0 : index
    %c0_10 = arith.constant 0 : index
    %12 = vector.load %arg5[%c0_9, %c0_10] : memref<64x128xbf16, #tpu.memory_space<vmem>>, vector<64x128xbf16>
    %cst_11 = arith.constant dense<0.000000e+00> : vector<16x128xf32>
    %13 = tpu.matmul %11, %12, %cst_11 {dimension_numbers = #tpu.dot_dimension_numbers<[1], [0], [0], [1], [0, 0, 1, 1], [], []>} : vector<16x64xbf16>, vector<64x128xbf16>, vector<16x128xf32> -> vector<16x128xf32>
    %14 = arith.addf %3, %13 : vector<16x128xf32>
    %c0_12 = arith.constant 0 : index
    %c0_13 = arith.constant 0 : index
    %15 = vector.load %arg6[%c0_12, %c0_13] : memref<1x128xf32, #tpu.memory_space<vmem>>, vector<1x128xf32>
    %16 = vector.broadcast %15 : vector<1x128xf32> to vector<16x128xf32>
    %17 = arith.addf %14, %16 : vector<16x128xf32>
    %18 = arith.truncf %17 : vector<16x128xf32> to vector<16x128xbf16>
    %c0_14 = arith.constant 0 : index
    %c0_15 = arith.constant 0 : index
    %19 = vector.load %arg7[%c0_14, %c0_15] : memref<16x128xbf16, #tpu.memory_space<vmem>>, vector<16x128xbf16>
    tpu.vector_store %arg7[%c0_14, %c0_15], %18 {strides = array<i32>} : memref<16x128xbf16, #tpu.memory_space<vmem>>, vector<16x128xbf16>,
    %20 = arith.mulf %17, %17 : vector<16x128xf32>
    %cst_16 = arith.constant dense<0.000000e+00> : vector<16xf32>
    %21 = vector.multi_reduction <add>, %20, %cst_16 [1] : vector<16x128xf32> to vector<16xf32>
    %22 = vector.shape_cast %21 : vector<16xf32> to vector<16x1xf32>
    %cst_17 = arith.constant 1.000000e-16 : f32
    %23 = vector.broadcast %cst_17 : f32 to vector<16x1xf32>
    %24 = arith.addf %22, %23 : vector<16x1xf32>
    %25 = math.rsqrt %24 : vector<16x1xf32>
    %26 = vector.broadcast %25 : vector<16x1xf32> to vector<16x128xf32>
    %27 = arith.mulf %17, %26 : vector<16x128xf32>
    %c0_18 = arith.constant 0 : index
    %c0_19 = arith.constant 0 : index
    %28 = vector.load %arg8[%c0_18, %c0_19] : memref<16x128xf32, #tpu.memory_space<vmem>>, vector<16x128xf32>
    tpu.vector_store %arg8[%c0_18, %c0_19], %27 {strides = array<i32>} : memref<16x128xf32, #tpu.memory_space<vmem>>, vector<16x128xf32>,
    return
  }
  func.func @transform_0(%arg0: i32) -> (i32, i32) {
    %c0_i32 = arith.constant 0 : i32
    %c0_i32_0 = arith.constant 0 : i32
    return %arg0, %c0_i32 : i32, i32
  }
  func.func @transform_1(%arg0: i32) -> (i32, i32) {
    %c0_i32 = arith.constant 0 : i32
    %c0_i32_0 = arith.constant 0 : i32
    %c0_i32_1 = arith.constant 0 : i32
    return %c0_i32, %c0_i32_0 : i32, i32
  }
  func.func @transform_2(%arg0: i32) -> (i32, i32) {
    %c0_i32 = arith.constant 0 : i32
    %c0_i32_0 = arith.constant 0 : i32
    %c0_i32_1 = arith.constant 0 : i32
    return %c0_i32, %c0_i32_0 : i32, i32
  }
  func.func @transform_3(%arg0: i32) -> (i32, i32) {
    %c0_i32 = arith.constant 0 : i32
    %c0_i32_0 = arith.constant 0 : i32
    %c0_i32_1 = arith.constant 0 : i32
    return %c0_i32, %c0_i32_0 : i32, i32
  }
  func.func @transform_4(%arg0: i32) -> (i32, i32) {
    %c0_i32 = arith.constant 0 : i32
    %c0_i32_0 = arith.constant 0 : i32
    %c0_i32_1 = arith.constant 0 : i32
    return %c0_i32, %c0_i32_0 : i32, i32
  }
  func.func @transform_5(%arg0: i32) -> (i32, i32) {
    %c0_i32 = arith.constant 0 : i32
    %c0_i32_0 = arith.constant 0 : i32
    %c0_i32_1 = arith.constant 0 : i32
    return %c0_i32, %c0_i32_0 : i32, i32
  }
  func.func @transform_6(%arg0: i32) -> (i32, i32) {
    %c0_i32 = arith.constant 0 : i32
    %c0_i32_0 = arith.constant 0 : i32
    return %arg0, %c0_i32 : i32, i32
  }
  func.func @transform_7(%arg0: i32) -> (i32, i32) {
    %c0_i32 = arith.constant 0 : i32
    %c0_i32_0 = arith.constant 0 : i32
    return %arg0, %c0_i32 : i32, i32
  }
}

module attributes {stable_mosaic.version = 11 : i64} {
  func.func @_feat_kernel(%arg0: i32, %arg1: memref<16x64xf32, #tpu.memory_space<vmem>>, %arg2: memref<64x128xbf16, #tpu.memory_space<vmem>>, %arg3: memref<64x64xbf16, #tpu.memory_space<vmem>>, %arg4: memref<1x64xf32, #tpu.memory_space<vmem>>, %arg5: memref<64x128xbf16, #tpu.memory_space<vmem>>, %arg6: memref<1x128xf32, #tpu.memory_space<vmem>>, %arg7: memref<16x128xbf16, #tpu.memory_space<vmem>>, %arg8: memref<16x128xf32, #tpu.memory_space<vmem>>) attributes {dimension_semantics = [#tpu.dimension_semantics<parallel>], iteration_bounds = array<i64: 1>, scalar_prefetch = 0 : i64, scratch_operands = 0 : i64, tpu.core_type = #tpu.core_type<tc>, window_params = [{transform_indices = @transform_0, window_bounds = array<i64: 16, 64>}, {pipeline_mode = #tpu.pipeline_mode<synchronous>, transform_indices = @transform_1, window_bounds = array<i64: 64, 128>}, {pipeline_mode = #tpu.pipeline_mode<synchronous>, transform_indices = @transform_2, window_bounds = array<i64: 64, 64>}, {pipeline_mode = #tpu.pipeline_mode<synchronous>, transform_indices = @transform_3, window_bounds = array<i64: 1, 64>}, {pipeline_mode = #tpu.pipeline_mode<synchronous>, transform_indices = @transform_4, window_bounds = array<i64: 64, 128>}, {pipeline_mode = #tpu.pipeline_mode<synchronous>, transform_indices = @transform_5, window_bounds = array<i64: 1, 128>}, {transform_indices = @transform_6, window_bounds = array<i64: 16, 128>}, {transform_indices = @transform_7, window_bounds = array<i64: 16, 128>}]} {
    %c0 = arith.constant 0 : index
    %c0_0 = arith.constant 0 : index
    %0 = vector.load %arg1[%c0, %c0_0] : memref<16x64xf32, #tpu.memory_space<vmem>>, vector<16x64xf32>
    %1 = arith.truncf %0 : vector<16x64xf32> to vector<16x64xbf16>
    %c0_1 = arith.constant 0 : index
    %c0_2 = arith.constant 0 : index
    %2 = vector.load %arg2[%c0_1, %c0_2] : memref<64x128xbf16, #tpu.memory_space<vmem>>, vector<64x128xbf16>
    %cst = arith.constant dense<0.000000e+00> : vector<16x128xf32>
    %3 = tpu.matmul %1, %2, %cst {dimension_numbers = #tpu.dot_dimension_numbers<[1], [0], [0], [1], [0, 0, 1, 1], [], []>} : vector<16x64xbf16>, vector<64x128xbf16>, vector<16x128xf32> -> vector<16x128xf32>
    %c0_3 = arith.constant 0 : index
    %c0_4 = arith.constant 0 : index
    %4 = vector.load %arg3[%c0_3, %c0_4] : memref<64x64xbf16, #tpu.memory_space<vmem>>, vector<64x64xbf16>
    %cst_5 = arith.constant dense<0.000000e+00> : vector<16x64xf32>
    %5 = tpu.matmul %1, %4, %cst_5 {dimension_numbers = #tpu.dot_dimension_numbers<[1], [0], [0], [1], [0, 0, 1, 1], [], []>} : vector<16x64xbf16>, vector<64x64xbf16>, vector<16x64xf32> -> vector<16x64xf32>
    %c0_6 = arith.constant 0 : index
    %c0_7 = arith.constant 0 : index
    %6 = vector.load %arg4[%c0_6, %c0_7] : memref<1x64xf32, #tpu.memory_space<vmem>>, vector<1x64xf32>
    %7 = vector.broadcast %6 : vector<1x64xf32> to vector<16x64xf32>
    %8 = arith.addf %5, %7 : vector<16x64xf32>
    %cst_8 = arith.constant 0.000000e+00 : f32
    %9 = vector.broadcast %cst_8 : f32 to vector<16x64xf32>
    %10 = arith.maximumf %8, %9 : vector<16x64xf32>
    %11 = arith.truncf %10 : vector<16x64xf32> to vector<16x64xbf16>
    %c0_9 = arith.constant 0 : index
    %c0_10 = arith.constant 0 : index
    %12 = vector.load %arg5[%c0_9, %c0_10] : memref<64x128xbf16, #tpu.memory_space<vmem>>, vector<64x128xbf16>
    %cst_11 = arith.constant dense<0.000000e+00> : vector<16x128xf32>
    %13 = tpu.matmul %11, %12, %cst_11 {dimension_numbers = #tpu.dot_dimension_numbers<[1], [0], [0], [1], [0, 0, 1, 1], [], []>} : vector<16x64xbf16>, vector<64x128xbf16>, vector<16x128xf32> -> vector<16x128xf32>
    %14 = arith.addf %3, %13 : vector<16x128xf32>
    %c0_12 = arith.constant 0 : index
    %c0_13 = arith.constant 0 : index
    %15 = vector.load %arg6[%c0_12, %c0_13] : memref<1x128xf32, #tpu.memory_space<vmem>>, vector<1x128xf32>
    %16 = vector.broadcast %15 : vector<1x128xf32> to vector<16x128xf32>
    %17 = arith.addf %14, %16 : vector<16x128xf32>
    %18 = arith.truncf %17 : vector<16x128xf32> to vector<16x128xbf16>
    %c0_14 = arith.constant 0 : index
    %c0_15 = arith.constant 0 : index
    %19 = vector.load %arg7[%c0_14, %c0_15] : memref<16x128xbf16, #tpu.memory_space<vmem>>, vector<16x128xbf16>
    tpu.vector_store %arg7[%c0_14, %c0_15], %18 {strides = array<i32>} : memref<16x128xbf16, #tpu.memory_space<vmem>>, vector<16x128xbf16>,
    %20 = arith.mulf %17, %17 : vector<16x128xf32>
    %cst_16 = arith.constant dense<0.000000e+00> : vector<16xf32>
    %21 = vector.multi_reduction <add>, %20, %cst_16 [1] : vector<16x128xf32> to vector<16xf32>
    %22 = vector.shape_cast %21 : vector<16xf32> to vector<16x1xf32>
    %cst_17 = arith.constant 1.000000e-16 : f32
    %23 = vector.broadcast %cst_17 : f32 to vector<16x1xf32>
    %24 = arith.addf %22, %23 : vector<16x1xf32>
    %25 = math.rsqrt %24 : vector<16x1xf32>
    %26 = vector.broadcast %25 : vector<16x1xf32> to vector<16x128xf32>
    %27 = arith.mulf %17, %26 : vector<16x128xf32>
    %c0_18 = arith.constant 0 : index
    %c0_19 = arith.constant 0 : index
    %28 = vector.load %arg8[%c0_18, %c0_19] : memref<16x128xf32, #tpu.memory_space<vmem>>, vector<16x128xf32>
    tpu.vector_store %arg8[%c0_18, %c0_19], %27 {strides = array<i32>} : memref<16x128xf32, #tpu.memory_space<vmem>>, vector<16x128xf32>,
    return
  }
  func.func @transform_0(%arg0: i32) -> (i32, i32) {
    %c0_i32 = arith.constant 0 : i32
    %c0_i32_0 = arith.constant 0 : i32
    return %arg0, %c0_i32 : i32, i32
  }
  func.func @transform_1(%arg0: i32) -> (i32, i32) {
    %c0_i32 = arith.constant 0 : i32
    %c0_i32_0 = arith.constant 0 : i32
    %c0_i32_1 = arith.constant 0 : i32
    return %c0_i32, %c0_i32_0 : i32, i32
  }
  func.func @transform_2(%arg0: i32) -> (i32, i32) {
    %c0_i32 = arith.constant 0 : i32
    %c0_i32_0 = arith.constant 0 : i32
    %c0_i32_1 = arith.constant 0 : i32
    return %c0_i32, %c0_i32_0 : i32, i32
  }
  func.func @transform_3(%arg0: i32) -> (i32, i32) {
    %c0_i32 = arith.constant 0 : i32
    %c0_i32_0 = arith.constant 0 : i32
    %c0_i32_1 = arith.constant 0 : i32
    return %c0_i32, %c0_i32_0 : i32, i32
  }
  func.func @transform_4(%arg0: i32) -> (i32, i32) {
    %c0_i32 = arith.constant 0 : i32
    %c0_i32_0 = arith.constant 0 : i32
    %c0_i32_1 = arith.constant 0 : i32
    return %c0_i32, %c0_i32_0 : i32, i32
  }
  func.func @transform_5(%arg0: i32) -> (i32, i32) {
    %c0_i32 = arith.constant 0 : i32
    %c0_i32_0 = arith.constant 0 : i32
    %c0_i32_1 = arith.constant 0 : i32
    return %c0_i32, %c0_i32_0 : i32, i32
  }
  func.func @transform_6(%arg0: i32) -> (i32, i32) {
    %c0_i32 = arith.constant 0 : i32
    %c0_i32_0 = arith.constant 0 : i32
    return %arg0, %c0_i32 : i32, i32
  }
  func.func @transform_7(%arg0: i32) -> (i32, i32) {
    %c0_i32 = arith.constant 0 : i32
    %c0_i32_0 = arith.constant 0 : i32
    return %arg0, %c0_i32 : i32, i32
  }
}

</mosaic_0001>

<bundles_post_ra>
// kernel: tpu_custom_call.1
= control target key start
LH: loop header
LB: loop body
LE: loop exit
PB: predicated region body
PF: predicated region fallthrough
CT: control target
= control target key end

     0   :  { %13 = vsyncpa [#allocation3], 0  ;;  %s798_s0 = inlined_call_operand.hbm [shape: f32[16,64], index: 0, kind: input, shape index: {}]   ;;  %s799_s1 = inlined_call_operand.hbm [shape: bf16[64,128], index: 1, kind: input, shape index: {}]   ;;  %s800_s2 = inlined_call_operand.hbm [shape: bf16[64,64], index: 2, kind: input, shape index: {}]   ;;  %s801_s3 = inlined_call_operand.vmem [shape: f32[1,64], index: 3, kind: input, shape index: {}]   ;;  %s802_s4 = inlined_call_operand.hbm [shape: bf16[64,128], index: 4, kind: input, shape index: {}]   ;;  %s803_s5 = inlined_call_operand.vmem [shape: f32[1,128], index: 5, kind: input, shape index: {}]   ;;  %s804_s6 = inlined_call_operand.hbm [shape: bf16[16,128], index: 6, kind: output, shape index: {0}]   ;;  %s805_s7 = inlined_call_operand.hbm [shape: f32[16,128], index: 7, kind: output, shape index: {1}]  }
   0x1   :  { %14 = vsyncpa [#allocation6], 0 }
   0x2   :  { %15 = vsyncpa [#allocation9], 0 }
   0x3   :  { %16 = vsyncpa [#allocation4], 0 }
   0x4   :  { %17 = vsyncpa [#allocation12], 0  ;;  %s637_s24 = smov [#allocation5]   ;;  %s495_s28 = scalar_lea.hbm %s799_s1, 512 }
   0x5   :  { %s35_s25 = sshll.u32 %s637_s24, 4  ;;  %p496_p0 = scmp.ne.s32.totalorder %s799_s1, %s495_s28  ;;  %s36_s25 = int_to_ptr.vmem [resolvable:$true] %s35_s25 }
   0x6   :  { %p499_p1 = scmp.lt.u32.totalorder %s495_s28, %s799_s1 }
   0x8   :  { %p501_p2 = pnand %p499_p1, %p496_p0 }
   0xa   :  { %504 = shalt.err (!%p501_p2)
}
   0xb   :  { %s505_s10 = scalar_lea.vmem %s36_s25, 512  ;;  %p510_p4 = scmp.lt.s32.totalorder %s36_s25, %s36_s25 }
   0xc   :  { %p506_p3 = scmp.ne.s32.totalorder %s36_s25, %s505_s10  ;;  %p511_p5 = scmp.lt.s32.totalorder %s505_s10, %s505_s10 }
   0xe   :  { %p512_p6 = por %p511_p5, %p510_p4 }
  0x10   :  { %p513_p7 = pnand %p512_p6, %p506_p3 }
  0x12   :  { %516 = shalt.err (!%p513_p7)
}
  0x13   :  { %s638_s11 = smov 64   ;;  %s639_s12 = smov 4  }
  0x14   :  { %41 = dma.hbm_to_vmem [thread:$0]  %s799_s1, 512, %s36_s25, [#allocation6], %s638_s11, %s638_s11, %s639_s12  }
  0x15   :  { %s640_s15 = smov [#allocation2]   ;;  %s517_s19 = scalar_lea.hbm %s798_s0, 256 }
  0x16   :  { %s23_s16 = sshll.u32 %s640_s15, 4  ;;  %p518_p8 = scmp.ne.s32.totalorder %s798_s0, %s517_s19  ;;  %s24_s16 = int_to_ptr.vmem [resolvable:$true] %s23_s16 }
  0x17   :  { %p521_p9 = scmp.lt.u32.totalorder %s517_s19, %s798_s0 }
  0x19   :  { %p523_p10 = pnand %p521_p9, %p518_p8 }
  0x1b   :  { %526 = shalt.err (!%p523_p10)
}
  0x1c   :  { %s527_s24 = scalar_lea.vmem %s24_s16, 256  ;;  %p532_p12 = scmp.lt.s32.totalorder %s24_s16, %s24_s16 }
  0x1d   :  { %p528_p11 = scmp.ne.s32.totalorder %s24_s16, %s527_s24  ;;  %p533_p13 = scmp.lt.s32.totalorder %s527_s24, %s527_s24 }
  0x1f   :  { %p534_p0 = por %p533_p13, %p532_p12 }
  0x21   :  { %p535_p1 = pnand %p534_p0, %p528_p11 }
  0x23   :  { %538 = shalt.err (!%p535_p1)
}
  0x24   :  { %s641_s1 = smov 128   ;;  %s642_s25 = smov 8  }
  0x25   :  { %29 = dma.hbm_to_vmem [thread:$0]  %s798_s0, 256, %s24_s16, [#allocation3], %s641_s1, %s641_s1, %s642_s25  }
  0x26   :  { %s643_s28 = smov [#allocation7]   ;;  %s644_s30 = smov [#allocation8]  }
  0x27   :  { %s47_s29 = sshll.u32 %s643_s28, 4  ;;  %s61_s8 = sshll.u32 %s644_s30, 4  ;;  %s48_s29 = int_to_ptr.vmem [resolvable:$true] %s47_s29  ;;  %s719_s8 = int_to_ptr.vmem [resolvable:$true] %s61_s8 }
  0x28   :  { %s539_s13 = scalar_lea.hbm %s800_s2, 512 }
  0x29   :  { %p540_p2 = scmp.ne.s32.totalorder %s800_s2, %s539_s13  ;;  %p543_p3 = scmp.lt.u32.totalorder %s539_s13, %s800_s2 }
  0x2b   :  { %p545_p4 = pnand %p543_p3, %p540_p2 }
  0x2d   :  { %548 = shalt.err (!%p545_p4)
}
  0x2e   :  { %s549_s0 = scalar_lea.vmem %s48_s29, 512  ;;  %p554_p6 = scmp.lt.s32.totalorder %s48_s29, %s48_s29 }
  0x2f   :  { %p550_p5 = scmp.ne.s32.totalorder %s48_s29, %s549_s0  ;;  %p555_p7 = scmp.lt.s32.totalorder %s549_s0, %s549_s0 }
  0x31   :  { %p556_p8 = por %p555_p7, %p554_p6 }
  0x33   :  { %p557_p9 = pnand %p556_p8, %p550_p5 }
  0x35   :  { %560 = shalt.err (!%p557_p9)
}
  0x36   :  { %53 = dma.hbm_to_vmem [thread:$0]  %s800_s2, 512, %s48_s29, [#allocation6], %s638_s11, %s638_s11, %s639_s12  }
  0x37   :  { %s561_s22 = scalar_lea.hbm %s802_s4, 512 }
  0x38   :  { %p562_p10 = scmp.ne.s32.totalorder %s802_s4, %s561_s22  ;;  %p565_p11 = scmp.lt.u32.totalorder %s561_s22, %s802_s4 }
  0x3a   :  { %p567_p12 = pnand %p565_p11, %p562_p10 }
  0x3c   :  { %570 = shalt.err (!%p567_p12)
}
  0x3d   :  { %s571_s28 = scalar_lea.vmem %s719_s8, 512  ;;  %p576_p0 = scmp.lt.s32.totalorder %s719_s8, %s719_s8 }
  0x3e   :  { %p572_p13 = scmp.ne.s32.totalorder %s719_s8, %s571_s28  ;;  %p577_p1 = scmp.lt.s32.totalorder %s571_s28, %s571_s28 }
  0x40   :  { %p578_p2 = por %p577_p1, %p576_p0 }
  0x42   :  { %p579_p3 = pnand %p578_p2, %p572_p13 }
  0x44   :  { %582 = shalt.err (!%p579_p3)
}
  0x45   :  { %67 = dma.hbm_to_vmem [thread:$0]  %s802_s4, 512, %s719_s8, [#allocation9], %s638_s11, %s638_s11, %s639_s12  }
  0x46   :  { %627 = dma.done.wait [#allocation3], 256  }
  0x47   :  { %628 = vsyncadd [#allocation3], 4294967040 }
  0x48   :  { %629 = dma.done.wait [#allocation6], 1024  }
  0x49   :  { %630 = vsyncadd [#allocation6], 4294966272 }
  0x4a   :  { %631 = dma.done.wait [#allocation9], 512  }
  0x4b   :  { %632 = vsyncadd [#allocation9], 4294966784  ;;  %v645_v0 = vmov 0.0   ;;  %vm646_vm0 = vmmov 0   ;;  %v479_v1 = vld [vmem:[#allocation7] sm:$0xff]   ;;  %v480_v2 = vld [vmem:[#allocation7 + $0x8] sm:$0xff]  }
  0x4c   :  { %431 = vmatprep.subr.bf16.mxu0 %v645_v0  ;;  %439 = vmatprep.mubr.msk.bf16.mxu0 %vm646_vm0, %v645_v0  ;;  %v481_v3 = vld [vmem:[#allocation7 + $0x10] sm:$0xff]   ;;  %v484_v4 = vld [vmem:[#allocation8] sm:$0xff]   ;;  %v482_v5 = vld [vmem:[#allocation7 + $0x18] sm:$0xff]   ;;  %vm133_vm1 = vcmask 523264  }
  0x4d   :  { %443 = vmatprep.subr.bf16.mxu1 %v645_v0  ;;  %451 = vmatprep.mubr.msk.bf16.mxu1 %vm646_vm0, %v645_v0  ;;  %v486_v6 = vld [vmem:[#allocation8 + $0x8] sm:$0xff]   ;;  %v83_v7 = vld [vmem:[#allocation2] sm:$0xff]  ;;  %v84_v8 = vld [vmem:[#allocation2 + $0x8] sm:$0xff] }
  0x4e   :  { %432 = vmatpush3.bf16.msra.mxu0 %v479_v1  ;;  %444 = vmatpush3.bf16.msra.mxu1 %v484_v4  ;;  %v85_v9 = vpack.c.bf16 %v84_v8, %v83_v7  ;;  %v483_v10 = vld [vmem:[#allocation5] sm:$0xff]   ;;  %v485_v11 = vld [vmem:[#allocation5 + $0x8] sm:$0xff]   ;;  %v487_v12 = vld [vmem:[#allocation5 + $0x10] sm:$0xff]  }
  0x4f   :  { %433 = vmatprep.subr.bf16.mxu0 %v645_v0  ;;  %445 = vmatprep.subr.bf16.mxu1 %v645_v0  ;;  %v488_v13 = vld [vmem:[#allocation8 + $0x10] sm:$0xff]   ;;  %v489_v14 = vld [vmem:[#allocation5 + $0x18] sm:$0xff]  }
  0x50   :  { %v490_v15 = vld [vmem:[#allocation8 + $0x18] sm:$0xff]   ;;  %v390_v16 = vld [vmem:[%s801_s3] ss:$0 sm:$0xff]  ;;  %s647_s3 = smov [#allocation10]  }
  0x51   :  { %v406_v31 = vld [vmem:[%s803_s5] ss:$0 sm:$0xff]  ;;  %s360_s10 = sshll.u32 %s647_s3, 4  ;;  %s361_s10 = int_to_ptr.vmem [resolvable:$true] %s360_s10 }
  0x52   :  { %434 = vmatpush3.bf16.msra.mxu0 %v480_v2  ;;  %446 = vmatpush3.bf16.msra.mxu1 %v486_v6  ;;  %s583_s13 = scalar_lea.vmem %s361_s10, 128  ;;  %p588_p5 = scmp.lt.s32.totalorder %s361_s10, %s361_s10 }
  0x53   :  { %435 = vmatprep.subr.bf16.mxu0 %v645_v0  ;;  %447 = vmatprep.subr.bf16.mxu1 %v645_v0  ;;  %p584_p4 = scmp.ne.s32.totalorder %s361_s10, %s583_s13  ;;  %p589_p6 = scmp.lt.s32.totalorder %s583_s13, %s583_s13 }
  0x55   :  { %p590_p7 = por %p589_p6, %p588_p5 }
  0x56   :  { %436 = vmatpush3.bf16.msra.mxu0 %v481_v3  ;;  %448 = vmatpush3.bf16.msra.mxu1 %v488_v13 }
  0x57   :  { %437 = vmatprep.subr.bf16.mxu0 %v645_v0  ;;  %449 = vmatprep.subr.bf16.mxu1 %v645_v0  ;;  %p591_p8 = pnand %p590_p7, %p584_p4 }
  0x5a   :  { %438 = vmatpush3.bf16.msra.mxu0 %v482_v5  ;;  %450 = vmatpush3.bf16.msra.mxu1 %v490_v15 }
  0x5b   :  { %455 = vmatprep.subr.bf16.mxu0 %v645_v0 }
  0x5d   :  { %440 = vmatmul.mubr.msk.bf16.vlgmr.msra.gmra.mrb[0].mxu0 %vm133_vm1, %v85_v9 }
  0x5e   :  { %456 = vmatpush3.bf16.msra.mxu0 %v483_v10  ;;  %463 = vmatprep.mubr.msk.bf16.mxu0 %vm646_vm0, %v645_v0 }
  0x5f   :  { %457 = vmatprep.subr.bf16.mxu0 %v645_v0 }
  0x62   :  { %458 = vmatpush3.bf16.msra.mxu0 %v485_v11 }
  0x63   :  { %459 = vmatprep.subr.bf16.mxu0 %v645_v0 }
  0x66   :  { %460 = vmatpush3.bf16.msra.mxu0 %v487_v12 }
  0x67   :  { %461 = vmatprep.subr.bf16.mxu0 %v645_v0 }
  0x6a   :  { %462 = vmatpush3.bf16.msra.mxu0 %v489_v14 }
  0x6d   :  { %464 = vmatmul.mubr.msk.bf16.vlgmr.msra.gmra.mrb[4].mxu0 %vm133_vm1, %v85_v9 }
 0x130   :  { %v171_v17 = vpop.f32.mrb[0].mxu0 }
 0x131   :  { %v172_v18 = vadd.f32 %v390_v16, %v171_v17  ;;  %v441_v19 = vpop.f32.mrb[1].mxu0 }
 0x132   :  { %v174_v20 = vpop.f32.mrb[2].mxu0 }
 0x133   :  { %v175_v21 = vadd.f32 %v390_v16, %v174_v20  ;;  %v442_v22 = vpop.f32.mrb[3].mxu0  ;;  %v178_v23 = vmax.f32 %v172_v18, 0.0 }
 0x135   :  { %v179_v24 = vmax.f32 %v175_v21, 0.0 }
 0x137   :  { %v180_v25 = vpack.c.bf16 %v179_v24, %v178_v23 }
 0x139   :  { %452 = vmatmul.mubr.msk.bf16.vlgmr.msra.gmra.mrb[0].mxu1 %vm133_vm1, %v180_v25 }
 0x140   :  { %v315_v26 = vpop.f32.mrb[4].mxu0 }
 0x141   :  { %v465_v27 = vpop.f32.mrb[5].mxu0 }
 0x142   :  { %v318_v28 = vpop.f32.mrb[6].mxu0 }
 0x143   :  { %v466_v29 = vpop.f32.mrb[7].mxu0 }
 0x20c   :  { %v250_v30 = vpop.f32.mrb[0].mxu1 }
 0x20d   :  { %v316_v32 = vadd.f32 %v315_v26, %v250_v30  ;;  %v453_v33 = vpop.f32.mrb[1].mxu1 }
 0x20e   :  { %v253_v34 = vpop.f32.mrb[2].mxu1 }
 0x20f   :  { %v329_v35 = vadd.f32 %v406_v31, %v316_v32  ;;  %v319_v36 = vadd.f32 %v318_v28, %v253_v34  ;;  %v454_v37 = vpop.f32.mrb[3].mxu1 }
 0x211   :  { %v330_v38 = vadd.f32 %v406_v31, %v319_v36  ;;  %v341_v39 = vmul.f32 %v329_v35, %v329_v35 }
 0x213   :  { %343 = vadd.xlane.f32.xlu0 %v341_v39  ;;  %v414_v40 = vpack.c.bf16 %v330_v38, %v329_v35  ;;  %v342_v41 = vmul.f32 %v330_v38, %v330_v38 }
 0x215   :  { %415 = vst [vmem:[#allocation10] sm:$0xff] %v414_v40  }
 0x217   :  { %345 = vadd.xlane.f32.xlu0 %v342_v41 }
 0x218   :  { %594 = shalt.err (!%p591_p8)
}
 0x219   :  { %s595_s15 = scalar_lea.hbm %s804_s6, 128 }
 0x21a   :  { %p596_p9 = scmp.ne.s32.totalorder %s804_s6, %s595_s15  ;;  %p599_p10 = scmp.lt.u32.totalorder %s595_s15, %s804_s6 }
 0x21c   :  { %p601_p11 = pnand %p599_p10, %p596_p9 }
 0x21e   :  { %604 = shalt.err (!%p601_p11)
}
 0x21f   :  { %366 = dma.vmem_to_hbm [thread:$0]  %s361_s10, 128, %s804_s6, [#allocation4], %s638_s11, %s638_s11, %s639_s12  }
 0x220   :  { %s648_s21 = smov [#allocation11]  }
 0x221   :  { %s372_s22 = sshll.u32 %s648_s21, 4  ;;  %s373_s22 = int_to_ptr.vmem [resolvable:$true] %s372_s22 }
 0x222   :  { %s605_s23 = scalar_lea.vmem %s373_s22, 256  ;;  %p610_p13 = scmp.lt.s32.totalorder %s373_s22, %s373_s22 }
 0x223   :  { %p606_p12 = scmp.ne.s32.totalorder %s373_s22, %s605_s23  ;;  %p611_p0 = scmp.lt.s32.totalorder %s605_s23, %s605_s23 }
 0x225   :  { %p612_p1 = por %p611_p0, %p610_p13 }
 0x227   :  { %p613_p2 = pnand %p612_p1, %p606_p12 }
 0x2a0   :  { %v344_v42 = vpop.xlane.xlu0 %343 }
 0x2a1   :  { %v347_v43 = vadd.f32 1e-16, %v344_v42 }
 0x2a3   :  { %491 = vrsqrt.f32 %v347_v43 }
 0x2a4   :  { %v346_v44 = vpop.xlane.xlu0 %345 }
 0x2a5   :  { %v348_v45 = vadd.f32 1e-16, %v346_v44 }
 0x2a7   :  { %493 = vrsqrt.f32 %v348_v45 }
 0x2ad   :  { %v492_v46 = vpop.eup %491 }
 0x2ae   :  { %v351_v47 = vmul.f32 %v492_v46, %v329_v35 }
 0x2b0   :  { %353 = vst [vmem:[#allocation11] sm:$0xff] %v351_v47 }
 0x2b1   :  { %v494_v48 = vpop.eup %493 }
 0x2b2   :  { %v352_v49 = vmul.f32 %v494_v48, %v330_v38 }
 0x2b4   :  { %354 = vst [vmem:[#allocation11 + $0x8] sm:$0xff] %v352_v49 }
 0x2b5   :  { %616 = shalt.err (!%p613_p2)
}
 0x2b6   :  { %s617_s12 = scalar_lea.hbm %s805_s7, 256 }
 0x2b7   :  { %p618_p3 = scmp.ne.s32.totalorder %s805_s7, %s617_s12  ;;  %p621_p4 = scmp.lt.u32.totalorder %s617_s12, %s805_s7 }
 0x2b9   :  { %p623_p5 = pnand %p621_p4, %p618_p3 }
 0x2bb   :  { %626 = shalt.err (!%p623_p5)
}
 0x2bc   :  { %378 = dma.vmem_to_hbm [thread:$0]  %s373_s22, 256, %s805_s7, [#allocation12], %s641_s1, %s641_s1, %s642_s25  }
 0x2bd   :  { %633 = dma.done.wait [#allocation4], 128  }
 0x2be   :  { %634 = vsyncadd [#allocation4], 4294967168 }
 0x2bf   :  { %635 = dma.done.wait [#allocation12], 256  }
 0x2c0   :  { %636 = vsyncadd [#allocation12], 4294967040 }
 0x2c1   :  { %385 = vsyncpa [#allocation3], 1 }
 0x2c2   :  { %386 = vsyncpa [#allocation6], 1 }
 0x2c3   :  { %387 = vsyncpa [#allocation9], 1 }
 0x2c4   :  { %388 = vsyncpa [#allocation4], 1 }
 0x2c5   :  { %389 = vsyncpa [#allocation12], 1 }

// kernel: tpu_custom_call.1
= control target key start
LH: loop header
LB: loop body
LE: loop exit
PB: predicated region body
PF: predicated region fallthrough
CT: control target
= control target key end

     0   :  { %13 = vsyncpa [#allocation3], 0  ;;  %s798_s0 = inlined_call_operand.hbm [shape: f32[16,64], index: 0, kind: input, shape index: {}]   ;;  %s799_s1 = inlined_call_operand.hbm [shape: bf16[64,128], index: 1, kind: input, shape index: {}]   ;;  %s800_s2 = inlined_call_operand.hbm [shape: bf16[64,64], index: 2, kind: input, shape index: {}]   ;;  %s801_s3 = inlined_call_operand.vmem [shape: f32[1,64], index: 3, kind: input, shape index: {}]   ;;  %s802_s4 = inlined_call_operand.hbm [shape: bf16[64,128], index: 4, kind: input, shape index: {}]   ;;  %s803_s5 = inlined_call_operand.vmem [shape: f32[1,128], index: 5, kind: input, shape index: {}]   ;;  %s804_s6 = inlined_call_operand.hbm [shape: bf16[16,128], index: 6, kind: output, shape index: {0}]   ;;  %s805_s7 = inlined_call_operand.hbm [shape: f32[16,128], index: 7, kind: output, shape index: {1}]  }
   0x1   :  { %14 = vsyncpa [#allocation6], 0 }
   0x2   :  { %15 = vsyncpa [#allocation9], 0 }
   0x3   :  { %16 = vsyncpa [#allocation4], 0 }
   0x4   :  { %17 = vsyncpa [#allocation12], 0  ;;  %s637_s24 = smov [#allocation5]   ;;  %s495_s28 = scalar_lea.hbm %s799_s1, 512 }
   0x5   :  { %s35_s25 = sshll.u32 %s637_s24, 4  ;;  %p496_p0 = scmp.ne.s32.totalorder %s799_s1, %s495_s28  ;;  %s36_s25 = int_to_ptr.vmem [resolvable:$true] %s35_s25 }
   0x6   :  { %p499_p1 = scmp.lt.u32.totalorder %s495_s28, %s799_s1 }
   0x8   :  { %p501_p2 = pnand %p499_p1, %p496_p0 }
   0xa   :  { %504 = shalt.err (!%p501_p2)
}
   0xb   :  { %s505_s10 = scalar_lea.vmem %s36_s25, 512  ;;  %p510_p4 = scmp.lt.s32.totalorder %s36_s25, %s36_s25 }
   0xc   :  { %p506_p3 = scmp.ne.s32.totalorder %s36_s25, %s505_s10  ;;  %p511_p5 = scmp.lt.s32.totalorder %s505_s10, %s505_s10 }
   0xe   :  { %p512_p6 = por %p511_p5, %p510_p4 }
  0x10   :  { %p513_p7 = pnand %p512_p6, %p506_p3 }
  0x12   :  { %516 = shalt.err (!%p513_p7)
}
  0x13   :  { %s638_s11 = smov 64   ;;  %s639_s12 = smov 4  }
  0x14   :  { %41 = dma.hbm_to_vmem [thread:$0]  %s799_s1, 512, %s36_s25, [#allocation6], %s638_s11, %s638_s11, %s639_s12  }
  0x15   :  { %s640_s15 = smov [#allocation2]   ;;  %s517_s19 = scalar_lea.hbm %s798_s0, 256 }
  0x16   :  { %s23_s16 = sshll.u32 %s640_s15, 4  ;;  %p518_p8 = scmp.ne.s32.totalorder %s798_s0, %s517_s19  ;;  %s24_s16 = int_to_ptr.vmem [resolvable:$true] %s23_s16 }
  0x17   :  { %p521_p9 = scmp.lt.u32.totalorder %s517_s19, %s798_s0 }
  0x19   :  { %p523_p10 = pnand %p521_p9, %p518_p8 }
  0x1b   :  { %526 = shalt.err (!%p523_p10)
}
  0x1c   :  { %s527_s24 = scalar_lea.vmem %s24_s16, 256  ;;  %p532_p12 = scmp.lt.s32.totalorder %s24_s16, %s24_s16 }
  0x1d   :  { %p528_p11 = scmp.ne.s32.totalorder %s24_s16, %s527_s24  ;;  %p533_p13 = scmp.lt.s32.totalorder %s527_s24, %s527_s24 }
  0x1f   :  { %p534_p0 = por %p533_p13, %p532_p12 }
  0x21   :  { %p535_p1 = pnand %p534_p0, %p528_p11 }
  0x23   :  { %538 = shalt.err (!%p535_p1)
}
  0x24   :  { %s641_s1 = smov 128   ;;  %s642_s25 = smov 8  }
  0x25   :  { %29 = dma.hbm_to_vmem [thread:$0]  %s798_s0, 256, %s24_s16, [#allocation3], %s641_s1, %s641_s1, %s642_s25  }
  0x26   :  { %s643_s28 = smov [#allocation7]   ;;  %s644_s30 = smov [#allocation8]  }
  0x27   :  { %s47_s29 = sshll.u32 %s643_s28, 4  ;;  %s61_s8 = sshll.u32 %s644_s30, 4  ;;  %s48_s29 = int_to_ptr.vmem [resolvable:$true] %s47_s29  ;;  %s719_s8 = int_to_ptr.vmem [resolvable:$true] %s61_s8 }
  0x28   :  { %s539_s13 = scalar_lea.hbm %s800_s2, 512 }
  0x29   :  { %p540_p2 = scmp.ne.s32.totalorder %s800_s2, %s539_s13  ;;  %p543_p3 = scmp.lt.u32.totalorder %s539_s13, %s800_s2 }
  0x2b   :  { %p545_p4 = pnand %p543_p3, %p540_p2 }
  0x2d   :  { %548 = shalt.err (!%p545_p4)
}
  0x2e   :  { %s549_s0 = scalar_lea.vmem %s48_s29, 512  ;;  %p554_p6 = scmp.lt.s32.totalorder %s48_s29, %s48_s29 }
  0x2f   :  { %p550_p5 = scmp.ne.s32.totalorder %s48_s29, %s549_s0  ;;  %p555_p7 = scmp.lt.s32.totalorder %s549_s0, %s549_s0 }
  0x31   :  { %p556_p8 = por %p555_p7, %p554_p6 }
  0x33   :  { %p557_p9 = pnand %p556_p8, %p550_p5 }
  0x35   :  { %560 = shalt.err (!%p557_p9)
}
  0x36   :  { %53 = dma.hbm_to_vmem [thread:$0]  %s800_s2, 512, %s48_s29, [#allocation6], %s638_s11, %s638_s11, %s639_s12  }
  0x37   :  { %s561_s22 = scalar_lea.hbm %s802_s4, 512 }
  0x38   :  { %p562_p10 = scmp.ne.s32.totalorder %s802_s4, %s561_s22  ;;  %p565_p11 = scmp.lt.u32.totalorder %s561_s22, %s802_s4 }
  0x3a   :  { %p567_p12 = pnand %p565_p11, %p562_p10 }
  0x3c   :  { %570 = shalt.err (!%p567_p12)
}
  0x3d   :  { %s571_s28 = scalar_lea.vmem %s719_s8, 512  ;;  %p576_p0 = scmp.lt.s32.totalorder %s719_s8, %s719_s8 }
  0x3e   :  { %p572_p13 = scmp.ne.s32.totalorder %s719_s8, %s571_s28  ;;  %p577_p1 = scmp.lt.s32.totalorder %s571_s28, %s571_s28 }
  0x40   :  { %p578_p2 = por %p577_p1, %p576_p0 }
  0x42   :  { %p579_p3 = pnand %p578_p2, %p572_p13 }
  0x44   :  { %582 = shalt.err (!%p579_p3)
}
  0x45   :  { %67 = dma.hbm_to_vmem [thread:$0]  %s802_s4, 512, %s719_s8, [#allocation9], %s638_s11, %s638_s11, %s639_s12  }
  0x46   :  { %627 = dma.done.wait [#allocation3], 256  }
  0x47   :  { %628 = vsyncadd [#allocation3], 4294967040 }
  0x48   :  { %629 = dma.done.wait [#allocation6], 1024  }
  0x49   :  { %630 = vsyncadd [#allocation6], 4294966272 }
  0x4a   :  { %631 = dma.done.wait [#allocation9], 512  }
  0x4b   :  { %632 = vsyncadd [#allocation9], 4294966784  ;;  %v645_v0 = vmov 0.0   ;;  %vm646_vm0 = vmmov 0   ;;  %v479_v1 = vld [vmem:[#allocation7] sm:$0xff]   ;;  %v480_v2 = vld [vmem:[#allocation7 + $0x8] sm:$0xff]  }
  0x4c   :  { %431 = vmatprep.subr.bf16.mxu0 %v645_v0  ;;  %439 = vmatprep.mubr.msk.bf16.mxu0 %vm646_vm0, %v645_v0  ;;  %v481_v3 = vld [vmem:[#allocation7 + $0x10] sm:$0xff]   ;;  %v484_v4 = vld [vmem:[#allocation8] sm:$0xff]   ;;  %v482_v5 = vld [vmem:[#allocation7 + $0x18] sm:$0xff]   ;;  %vm133_vm1 = vcmask 523264  }
  0x4d   :  { %443 = vmatprep.subr.bf16.mxu1 %v645_v0  ;;  %451 = vmatprep.mubr.msk.bf16.mxu1 %vm646_vm0, %v645_v0  ;;  %v486_v6 = vld [vmem:[#allocation8 + $0x8] sm:$0xff]   ;;  %v83_v7 = vld [vmem:[#allocation2] sm:$0xff]  ;;  %v84_v8 = vld [vmem:[#allocation2 + $0x8] sm:$0xff] }
  0x4e   :  { %432 = vmatpush3.bf16.msra.mxu0 %v479_v1  ;;  %444 = vmatpush3.bf16.msra.mxu1 %v484_v4  ;;  %v85_v9 = vpack.c.bf16 %v84_v8, %v83_v7  ;;  %v483_v10 = vld [vmem:[#allocation5] sm:$0xff]   ;;  %v485_v11 = vld [vmem:[#allocation5 + $0x8] sm:$0xff]   ;;  %v487_v12 = vld [vmem:[#allocation5 + $0x10] sm:$0xff]  }
  0x4f   :  { %433 = vmatprep.subr.bf16.mxu0 %v645_v0  ;;  %445 = vmatprep.subr.bf16.mxu1 %v645_v0  ;;  %v488_v13 = vld [vmem:[#allocation8 + $0x10] sm:$0xff]   ;;  %v489_v14 = vld [vmem:[#allocation5 + $0x18] sm:$0xff]  }
  0x50   :  { %v490_v15 = vld [vmem:[#allocation8 + $0x18] sm:$0xff]   ;;  %v390_v16 = vld [vmem:[%s801_s3] ss:$0 sm:$0xff]  ;;  %s647_s3 = smov [#allocation10]  }
  0x51   :  { %v406_v31 = vld [vmem:[%s803_s5] ss:$0 sm:$0xff]  ;;  %s360_s10 = sshll.u32 %s647_s3, 4  ;;  %s361_s10 = int_to_ptr.vmem [resolvable:$true] %s360_s10 }
  0x52   :  { %434 = vmatpush3.bf16.msra.mxu0 %v480_v2  ;;  %446 = vmatpush3.bf16.msra.mxu1 %v486_v6  ;;  %s583_s13 = scalar_lea.vmem %s361_s10, 128  ;;  %p588_p5 = scmp.lt.s32.totalorder %s361_s10, %s361_s10 }
  0x53   :  { %435 = vmatprep.subr.bf16.mxu0 %v645_v0  ;;  %447 = vmatprep.subr.bf16.mxu1 %v645_v0  ;;  %p584_p4 = scmp.ne.s32.totalorder %s361_s10, %s583_s13  ;;  %p589_p6 = scmp.lt.s32.totalorder %s583_s13, %s583_s13 }
  0x55   :  { %p590_p7 = por %p589_p6, %p588_p5 }
  0x56   :  { %436 = vmatpush3.bf16.msra.mxu0 %v481_v3  ;;  %448 = vmatpush3.bf16.msra.mxu1 %v488_v13 }
  0x57   :  { %437 = vmatprep.subr.bf16.mxu0 %v645_v0  ;;  %449 = vmatprep.subr.bf16.mxu1 %v645_v0  ;;  %p591_p8 = pnand %p590_p7, %p584_p4 }
  0x5a   :  { %438 = vmatpush3.bf16.msra.mxu0 %v482_v5  ;;  %450 = vmatpush3.bf16.msra.mxu1 %v490_v15 }
  0x5b   :  { %455 = vmatprep.subr.bf16.mxu0 %v645_v0 }
  0x5d   :  { %440 = vmatmul.mubr.msk.bf16.vlgmr.msra.gmra.mrb[0].mxu0 %vm133_vm1, %v85_v9 }
  0x5e   :  { %456 = vmatpush3.bf16.msra.mxu0 %v483_v10  ;;  %463 = vmatprep.mubr.msk.bf16.mxu0 %vm646_vm0, %v645_v0 }
  0x5f   :  { %457 = vmatprep.subr.bf16.mxu0 %v645_v0 }
  0x62   :  { %458 = vmatpush3.bf16.msra.mxu0 %v485_v11 }
  0x63   :  { %459 = vmatprep.subr.bf16.mxu0 %v645_v0 }
  0x66   :  { %460 = vmatpush3.bf16.msra.mxu0 %v487_v12 }
  0x67   :  { %461 = vmatprep.subr.bf16.mxu0 %v645_v0 }
  0x6a   :  { %462 = vmatpush3.bf16.msra.mxu0 %v489_v14 }
  0x6d   :  { %464 = vmatmul.mubr.msk.bf16.vlgmr.msra.gmra.mrb[4].mxu0 %vm133_vm1, %v85_v9 }
 0x130   :  { %v171_v17 = vpop.f32.mrb[0].mxu0 }
 0x131   :  { %v172_v18 = vadd.f32 %v390_v16, %v171_v17  ;;  %v441_v19 = vpop.f32.mrb[1].mxu0 }
 0x132   :  { %v174_v20 = vpop.f32.mrb[2].mxu0 }
 0x133   :  { %v175_v21 = vadd.f32 %v390_v16, %v174_v20  ;;  %v442_v22 = vpop.f32.mrb[3].mxu0  ;;  %v178_v23 = vmax.f32 %v172_v18, 0.0 }
 0x135   :  { %v179_v24 = vmax.f32 %v175_v21, 0.0 }
 0x137   :  { %v180_v25 = vpack.c.bf16 %v179_v24, %v178_v23 }
 0x139   :  { %452 = vmatmul.mubr.msk.bf16.vlgmr.msra.gmra.mrb[0].mxu1 %vm133_vm1, %v180_v25 }
 0x140   :  { %v315_v26 = vpop.f32.mrb[4].mxu0 }
 0x141   :  { %v465_v27 = vpop.f32.mrb[5].mxu0 }
 0x142   :  { %v318_v28 = vpop.f32.mrb[6].mxu0 }
 0x143   :  { %v466_v29 = vpop.f32.mrb[7].mxu0 }
 0x20c   :  { %v250_v30 = vpop.f32.mrb[0].mxu1 }
 0x20d   :  { %v316_v32 = vadd.f32 %v315_v26, %v250_v30  ;;  %v453_v33 = vpop.f32.mrb[1].mxu1 }
 0x20e   :  { %v253_v34 = vpop.f32.mrb[2].mxu1 }
 0x20f   :  { %v329_v35 = vadd.f32 %v406_v31, %v316_v32  ;;  %v319_v36 = vadd.f32 %v318_v28, %v253_v34  ;;  %v454_v37 = vpop.f32.mrb[3].mxu1 }
 0x211   :  { %v330_v38 = vadd.f32 %v406_v31, %v319_v36  ;;  %v341_v39 = vmul.f32 %v329_v35, %v329_v35 }
 0x213   :  { %343 = vadd.xlane.f32.xlu0 %v341_v39  ;;  %v414_v40 = vpack.c.bf16 %v330_v38, %v329_v35  ;;  %v342_v41 = vmul.f32 %v330_v38, %v330_v38 }
 0x215   :  { %415 = vst [vmem:[#allocation10] sm:$0xff] %v414_v40  }
 0x217   :  { %345 = vadd.xlane.f32.xlu0 %v342_v41 }
 0x218   :  { %594 = shalt.err (!%p591_p8)
}
 0x219   :  { %s595_s15 = scalar_lea.hbm %s804_s6, 128 }
 0x21a   :  { %p596_p9 = scmp.ne.s32.totalorder %s804_s6, %s595_s15  ;;  %p599_p10 = scmp.lt.u32.totalorder %s595_s15, %s804_s6 }
 0x21c   :  { %p601_p11 = pnand %p599_p10, %p596_p9 }
 0x21e   :  { %604 = shalt.err (!%p601_p11)
}
 0x21f   :  { %366 = dma.vmem_to_hbm [thread:$0]  %s361_s10, 128, %s804_s6, [#allocation4], %s638_s11, %s638_s11, %s639_s12  }
 0x220   :  { %s648_s21 = smov [#allocation11]  }
 0x221   :  { %s372_s22 = sshll.u32 %s648_s21, 4  ;;  %s373_s22 = int_to_ptr.vmem [resolvable:$true] %s372_s22 }
 0x222   :  { %s605_s23 = scalar_lea.vmem %s373_s22, 256  ;;  %p610_p13 = scmp.lt.s32.totalorder %s373_s22, %s373_s22 }
 0x223   :  { %p606_p12 = scmp.ne.s32.totalorder %s373_s22, %s605_s23  ;;  %p611_p0 = scmp.lt.s32.totalorder %s605_s23, %s605_s23 }
 0x225   :  { %p612_p1 = por %p611_p0, %p610_p13 }
 0x227   :  { %p613_p2 = pnand %p612_p1, %p606_p12 }
 0x2a0   :  { %v344_v42 = vpop.xlane.xlu0 %343 }
 0x2a1   :  { %v347_v43 = vadd.f32 1e-16, %v344_v42 }
 0x2a3   :  { %491 = vrsqrt.f32 %v347_v43 }
 0x2a4   :  { %v346_v44 = vpop.xlane.xlu0 %345 }
 0x2a5   :  { %v348_v45 = vadd.f32 1e-16, %v346_v44 }
 0x2a7   :  { %493 = vrsqrt.f32 %v348_v45 }
 0x2ad   :  { %v492_v46 = vpop.eup %491 }
 0x2ae   :  { %v351_v47 = vmul.f32 %v492_v46, %v329_v35 }
 0x2b0   :  { %353 = vst [vmem:[#allocation11] sm:$0xff] %v351_v47 }
 0x2b1   :  { %v494_v48 = vpop.eup %493 }
 0x2b2   :  { %v352_v49 = vmul.f32 %v494_v48, %v330_v38 }
 0x2b4   :  { %354 = vst [vmem:[#allocation11 + $0x8] sm:$0xff] %v352_v49 }
 0x2b5   :  { %616 = shalt.err (!%p613_p2)
}
 0x2b6   :  { %s617_s12 = scalar_lea.hbm %s805_s7, 256 }
 0x2b7   :  { %p618_p3 = scmp.ne.s32.totalorder %s805_s7, %s617_s12  ;;  %p621_p4 = scmp.lt.u32.totalorder %s617_s12, %s805_s7 }
 0x2b9   :  { %p623_p5 = pnand %p621_p4, %p618_p3 }
 0x2bb   :  { %626 = shalt.err (!%p623_p5)
}
 0x2bc   :  { %378 = dma.vmem_to_hbm [thread:$0]  %s373_s22, 256, %s805_s7, [#allocation12], %s641_s1, %s641_s1, %s642_s25  }
 0x2bd   :  { %633 = dma.done.wait [#allocation4], 128  }
 0x2be   :  { %634 = vsyncadd [#allocation4], 4294967168 }
 0x2bf   :  { %635 = dma.done.wait [#allocation12], 256  }
 0x2c0   :  { %636 = vsyncadd [#allocation12], 4294967040 }
 0x2c1   :  { %385 = vsyncpa [#allocation3], 1 }
 0x2c2   :  { %386 = vsyncpa [#allocation6], 1 }
 0x2c3   :  { %387 = vsyncpa [#allocation9], 1 }
 0x2c4   :  { %388 = vsyncpa [#allocation4], 1 }
 0x2c5   :  { %389 = vsyncpa [#allocation12], 1 }

</bundles_post_ra>
